<compile_context>
chip_gen: v7x
topology: tpu7x:2x2x1
jax: 0.10.0
libtpu: 0.0.40
codegen_flags: <defaults>
</compile_context>

<pallas_src>
from functools import partial

import jax
import jax.numpy as jnp
from jax.experimental import pallas as pl
from jax.experimental.pallas import tpu as pltpu


# ----------------------------------------------------------------------------
# Kernel
# ----------------------------------------------------------------------------
def seg_detector_kernel(xs_ref, w1_ref, b1_ref, w2_ref, b2_ref, out_ref,
                        *, Wp, LOUT):
    """One (batch, row-strip) tile.

    xs_ref : (1, 1, C, LIP)    bf16  padded strip, spatial flattened on lanes
                                     (row r, col c of the padded strip lives at
                                     lane r*Wp + c; LIP is 128-rounded)
    w1_ref : (9, 2*Cq, C)      bf16  fused ConvBn3x3 weights, tap-major, both heads
    b1_ref : (2*Cq, 1)         f32   fused BN bias, both heads
    w2_ref : (2, 2*Cq)         f32   block-diagonal fused ConvBn1x1 weights
    b2_ref : (2, 1)            f32   fused BN bias (binarize row 0, thresh row 1)
    out_ref: (1, 1, 2, LOUT)   bf16  sigmoid outputs, LOUT = STRIP_H*Wp lanes
                                     (2 junk cols per row dropped in the wrapper)
    """
    Cq2 = w1_ref.shape[1]

    # 3x3 conv for both heads: 9 per-tap MXU matmuls, each tap is a pure
    # lane-shift window of the flattened strip (no im2col buffer, no relayout).
    acc = jnp.zeros((Cq2, LOUT), jnp.float32)
    for t in range(9):
        dh, dw = divmod(t, 3)
        off = dh * Wp + dw
        tap = xs_ref[0, 0, :, pl.ds(off, LOUT)]          # (C, LOUT) bf16
        acc = acc + jnp.dot(w1_ref[t], tap, preferred_element_type=jnp.float32)

    y = jnp.maximum(acc + b1_ref[...], 0.0)              # fused BN bias + ReLU

    # 1x1 ConvBn for both heads as one tiny matmul (<1% of work).
    z = jnp.dot(w2_ref[...], y, preferred_element_type=jnp.float32) + b2_ref[...]

    out_ref[0, 0] = jax.nn.sigmoid(z).astype(out_ref.dtype)   # lane-dense store


# ----------------------------------------------------------------------------
# VMEM budgeting / strip selection
# ----------------------------------------------------------------------------
def _round_up(x, m):
    return (x + m - 1) // m * m


def _lane_len(strip_h, W):
    Wp = W + 2
    lin = (strip_h + 2) * Wp
    # +2: the (dh=2, dw=2) tap window runs 2 junk lanes past the strip end.
    return _round_up(lin + 2, 128), lin


def _vmem_bytes_estimate(C, Cq2, lip, lout):
    lout_p = _round_up(lout, 128)
    in_blk = _round_up(C, 8) * lip * 2                              # bf16 strip
    w1_blk = 9 * _round_up(Cq2, 8) * _round_up(C, 128) * 2
    b1_blk = _round_up(Cq2, 8) * 128 * 4
    w2_blk = 8 * _round_up(Cq2, 128) * 4
    b2_blk = 8 * 128 * 4
    out_blk = 8 * lout_p * 2
    # live intermediates: f32 acc + y, one bf16 tap, f32 z
    interm = (2 * _round_up(Cq2, 8) * lout_p * 4
              + _round_up(C, 8) * lout_p * 2 + 8 * lout_p * 4)
    return 2 * (in_blk + w1_blk + b1_blk + w2_blk + b2_blk + out_blk) + interm


def _choose_strip_h(N, H, W, C, Cq2, budget_bytes=40 << 20):
    """Largest divisor of H whose double-buffered working set fits the budget
    (40 MiB default -> headroom under v7x's 64 MiB VMEM), preferring >= 2 total
    grid units so both v7x TensorCores get work."""
    divisors = [d for d in range(1, H + 1) if H % d == 0]
    fitting = [d for d in divisors
               if _vmem_bytes_estimate(C, Cq2, *_lane_len(d, W)[:1],
                                       d * (W + 2)) <= budget_bytes]
    if not fitting:
        fitting = [1]
    pref = [d for d in fitting if N * (H // d) >= 2] or fitting
    return max(pref)


# ----------------------------------------------------------------------------
# Forward wrapper
# ----------------------------------------------------------------------------
@partial(jax.jit, static_argnames=("strip_h",))
def seg_detector_forward(x_nchw, params, *, strip_h=None):
    N, C, H, W = x_nchw.shape
    Wp = W + 2
    Cq2 = params["w1"].shape[1]                  # 2 * (C // 4)

    if strip_h is None:
        strip_h = _choose_strip_h(N, H, W, C, Cq2)
    SH = strip_h
    assert H % SH == 0, "strip_h must divide H"  # TODO(synk): ragged last strip
    NS = H // SH
    LOUT = SH * Wp
    LIP, LIN = _lane_len(SH, W)

    # bf16 BEFORE padding (halves pad traffic), then spatial pad for the halo.
    xpad = jnp.pad(x_nchw.astype(jnp.bfloat16),
                   ((0, 0), (0, 0), (1, 1), (1, 1)))          # (N, C, H+2, Wp)

    # Host-side overlapping strip extraction (1-row halo on each side), spatial
    # flattened onto the lane axis and lane-padded to a multiple of 128.
    rows = jnp.arange(NS)[:, None] * SH + jnp.arange(SH + 2)[None, :]   # (NS,SH+2)
    strips = jnp.moveaxis(xpad[:, :, rows, :], 2, 1)           # (N, NS, C, SH+2, Wp)
    strips = strips.reshape(N, NS, C, LIN)
    strips = jnp.pad(strips, ((0, 0), (0, 0), (0, 0), (0, LIP - LIN)))

    vmem_est = _vmem_bytes_estimate(C, Cq2, LIP, LOUT)
    vmem_limit = int(min(max(2 * vmem_est, 32 << 20), 48 << 20))

    kernel = partial(seg_detector_kernel, Wp=Wp, LOUT=LOUT)

    z = pl.pallas_call(
        kernel,
        out_shape=jax.ShapeDtypeStruct((N, NS, 2, LOUT), jnp.bfloat16),
        grid=(N, NS),
        in_specs=[
            pl.BlockSpec((1, 1, C, LIP), lambda n, s: (n, s, 0, 0)),
            pl.BlockSpec((9, Cq2, C), lambda n, s: (0, 0, 0)),
            pl.BlockSpec((Cq2, 1), lambda n, s: (0, 0)),
            pl.BlockSpec((2, Cq2), lambda n, s: (0, 0)),
            pl.BlockSpec((2, 1), lambda n, s: (0, 0)),
        ],
        out_specs=pl.BlockSpec((1, 1, 2, LOUT), lambda n, s: (n, s, 0, 0)),
        compiler_params=pltpu.CompilerParams(
            dimension_semantics=("parallel", "parallel"),
            vmem_limit_bytes=vmem_limit),
    )(strips, params["w1"], params["b1"], params["w2"], params["b2"])

    # Drop the 2 junk columns per row, then nearest 4x upsample via
    # broadcast+reshape (no repeat).  Output stays bf16 to halve HBM writeback;
    # append .astype(jnp.float32) here if strict f32 parity is needed.
    z = jnp.moveaxis(z.reshape(N, NS, 2, SH, Wp), 2, 1).reshape(N, 2, H, Wp)
    z = z[:, :, :, :W]
    up = jnp.broadcast_to(z[:, :, :, None, :, None],
                          (N, 2, H, 4, W, 4)).reshape(N, 2, 4 * H, 4 * W)
    binary = up[:, 0:1]                          # (N, 1, 4H, 4W)
    thresh = up[:, 1:2]                          # (N, 1, 4H, 4W)
    return thresh, binary                        # match PyTorch return order


# ----------------------------------------------------------------------------
# Synthetic fused parameters (BatchNorm folded, both heads merged)
# ----------------------------------------------------------------------------
def make_params(key, C, Cq):
    """BN: gamma=1, mean=0, var=1, eps=1e-5; beta=0.0001 for the binarize head
    (weights_init), 0.0 for thresh. Conv weights kaiming-normal-like. Packed
    tap-major (9, 2Cq, C) for the lane-shift kernel; heads merged on the
    output-channel axis; 1x1 weights packed block-diagonally."""
    eps = 1e-5
    bn_scale = 1.0 / jnp.sqrt(jnp.float32(1.0 + eps))
    k1, k2, k3, k4 = jax.random.split(key, 4)

    def branch(kc1, kc2, beta1, beta2):
        std1 = (2.0 / (C * 9)) ** 0.5
        w1 = jax.random.normal(kc1, (3, 3, C, Cq), jnp.float32) * std1 * bn_scale
        w1t = jnp.transpose(w1, (0, 1, 3, 2)).reshape(9, Cq, C)   # tap-major
        b1 = jnp.full((Cq, 1), beta1, jnp.float32)
        std2 = (2.0 / Cq) ** 0.5
        w2 = jax.random.normal(kc2, (Cq,), jnp.float32) * std2 * bn_scale
        return w1t, b1, w2.reshape(1, Cq), jnp.full((1, 1), beta2, jnp.float32)

    w1_bin, b1_bin, w2_bin, b2_bin = branch(k1, k2, 0.0001, 0.0001)
    w1_thr, b1_thr, w2_thr, b2_thr = branch(k3, k4, 0.0, 0.0)

    w1 = jnp.concatenate([w1_bin, w1_thr], axis=1).astype(jnp.bfloat16)  # (9,2Cq,C)
    b1 = jnp.concatenate([b1_bin, b1_thr], axis=0)                       # (2Cq,1)
    zeros = jnp.zeros((1, Cq), jnp.float32)
    w2 = jnp.concatenate(
        [jnp.concatenate([w2_bin, zeros], axis=1),
         jnp.concatenate([zeros, w2_thr], axis=1)], axis=0)              # (2,2Cq)
    b2 = jnp.concatenate([b2_bin, b2_thr], axis=0)                       # (2,1)
    return dict(w1=w1, b1=b1, w2=w2, b2=b2)


def reference_forward(x, params):
    """Pure-JAX f32 reference using the same fused weights (unpacked layout)."""
    N, C, H, W = x.shape
    w1 = params["w1"].astype(jnp.float32)                # (9, 2Cq, C)
    Cq2 = w1.shape[1]
    xpad = jnp.pad(x, ((0, 0), (0, 0), (1, 1), (1, 1)))
    acc = jnp.zeros((N, Cq2, H, W), jnp.float32)
    for t in range(9):
        dh, dw = divmod(t, 3)
        acc = acc + jnp.einsum("oc,nchw->nohw", w1[t],
                               xpad[:, :, dh:dh + H, dw:dw + W])
    y = jnp.maximum(acc + params["b1"].reshape(1, Cq2, 1, 1), 0.0)
    z = jnp.einsum("ok,nkhw->nohw", params["w2"], y) + params["b2"].reshape(1, 2, 1, 1)
    p = jax.nn.sigmoid(z)
    up = jnp.broadcast_to(p[:, :, :, None, :, None],
                          (N, 2, H, 4, W, 4)).reshape(N, 2, 4 * H, 4 * W)
    return up[:, 1:2], up[:, 0:1]                        # (thresh, binary)


if __name__ == "__main__":
    # Small shapes consistent with the module (inner_channels=32 -> hidden 8),
    # batch=2, spatial 16x16; strip_h=8 exercises the row-strip grid (2 strips).
    N, C, H, W = 2, 32, 16, 16
    Cq = C // 4

    key = jax.random.PRNGKey(0)
    kx, kp = jax.random.split(key)
    fuse = jax.random.normal(kx, (N, C, H, W), jnp.float32)
    params = make_params(kp, C, Cq)

    thresh, binary = seg_detector_forward(fuse, params, strip_h=8)
    jax.block_until_ready((thresh, binary))

    assert thresh.shape == (N, 1, 4 * H, 4 * W)
    assert binary.shape == (N, 1, 4 * H, 4 * W)
    assert bool(jnp.all((thresh >= 0) & (thresh <= 1)))
    assert bool(jnp.all((binary >= 0) & (binary <= 1)))

    # Validate against a pure-JAX f32 reference (bf16 input/weight/store -> loose tol).
    ref_thresh, ref_binary = reference_forward(fuse, params)
    err = max(float(jnp.max(jnp.abs(thresh.astype(jnp.float32) - ref_thresh))),
              float(jnp.max(jnp.abs(binary.astype(jnp.float32) - ref_binary))))
    assert err < 2e-2, f"mismatch vs reference: {err}"

    print("KERNEL_OK")
</pallas_src>

<mosaic_0001>
module attributes {stable_mosaic.version = 11 : i64} {
  func.func @seg_detector_kernel(%arg0: i32, %arg1: i32, %arg2: memref<1x1x32x256xbf16, #tpu.memory_space<vmem>>, %arg3: memref<9x16x32xbf16, #tpu.memory_space<vmem>>, %arg4: memref<16x1xf32, #tpu.memory_space<vmem>>, %arg5: memref<2x16xf32, #tpu.memory_space<vmem>>, %arg6: memref<2x1xf32, #tpu.memory_space<vmem>>, %arg7: memref<1x1x2x144xbf16, #tpu.memory_space<vmem>>) attributes {dimension_semantics = [#tpu.dimension_semantics<parallel>, #tpu.dimension_semantics<parallel>], iteration_bounds = array<i64: 2, 2>, scalar_prefetch = 0 : i64, scratch_operands = 0 : i64, tpu.core_type = #tpu.core_type<tc>, window_params = [{transform_indices = @transform_0, window_bounds = array<i64: 1, 1, 32, 256>}, {pipeline_mode = #tpu.pipeline_mode<synchronous>, transform_indices = @transform_1, window_bounds = array<i64: 9, 16, 32>}, {pipeline_mode = #tpu.pipeline_mode<synchronous>, transform_indices = @transform_2, window_bounds = array<i64: 16, 1>}, {pipeline_mode = #tpu.pipeline_mode<synchronous>, transform_indices = @transform_3, window_bounds = array<i64: 2, 16>}, {pipeline_mode = #tpu.pipeline_mode<synchronous>, transform_indices = @transform_4, window_bounds = array<i64: 2, 1>}, {transform_indices = @transform_5, window_bounds = array<i64: 1, 1, 2, 144>}]} {
    %cst = arith.constant 0.000000e+00 : f32
    %0 = vector.broadcast %cst : f32 to vector<16x144xf32>
    %c0 = arith.constant 0 : index
    %c0_0 = arith.constant 0 : index
    %c0_1 = arith.constant 0 : index
    %c0_2 = arith.constant 0 : index
    %1 = vector.load %arg2[%c0, %c0_0, %c0_1, %c0_2] : memref<1x1x32x256xbf16, #tpu.memory_space<vmem>>, vector<1x1x32x144xbf16>
    %2 = vector.shape_cast %1 : vector<1x1x32x144xbf16> to vector<32x144xbf16>
    %c0_3 = arith.constant 0 : index
    %c0_4 = arith.constant 0 : index
    %c0_5 = arith.constant 0 : index
    %3 = vector.load %arg3[%c0_3, %c0_4, %c0_5] : memref<9x16x32xbf16, #tpu.memory_space<vmem>>, vector<1x16x32xbf16>
    %4 = vector.shape_cast %3 : vector<1x16x32xbf16> to vector<16x32xbf16>
    %cst_6 = arith.constant dense<0.000000e+00> : vector<16x144xf32>
    %5 = tpu.matmul %4, %2, %cst_6 {dimension_numbers = #tpu.dot_dimension_numbers<[1], [0], [0], [1], [0, 0, 1, 1], [], []>} : vector<16x32xbf16>, vector<32x144xbf16>, vector<16x144xf32> -> vector<16x144xf32>
    %6 = arith.addf %0, %5 : vector<16x144xf32>
    %c0_7 = arith.constant 0 : index
    %c0_8 = arith.constant 0 : index
    %c0_9 = arith.constant 0 : index
    %c1 = arith.constant 1 : index
    %7 = vector.load %arg2[%c0_7, %c0_8, %c0_9, %c1] : memref<1x1x32x256xbf16, #tpu.memory_space<vmem>>, vector<1x1x32x144xbf16>
    %8 = vector.shape_cast %7 : vector<1x1x32x144xbf16> to vector<32x144xbf16>
    %c1_10 = arith.constant 1 : index
    %c0_11 = arith.constant 0 : index
    %c0_12 = arith.constant 0 : index
    %9 = vector.load %arg3[%c1_10, %c0_11, %c0_12] : memref<9x16x32xbf16, #tpu.memory_space<vmem>>, vector<1x16x32xbf16>
    %10 = vector.shape_cast %9 : vector<1x16x32xbf16> to vector<16x32xbf16>
    %cst_13 = arith.constant dense<0.000000e+00> : vector<16x144xf32>
    %11 = tpu.matmul %10, %8, %cst_13 {dimension_numbers = #tpu.dot_dimension_numbers<[1], [0], [0], [1], [0, 0, 1, 1], [], []>} : vector<16x32xbf16>, vector<32x144xbf16>, vector<16x144xf32> -> vector<16x144xf32>
    %12 = arith.addf %6, %11 : vector<16x144xf32>
    %c0_14 = arith.constant 0 : index
    %c0_15 = arith.constant 0 : index
    %c0_16 = arith.constant 0 : index
    %c2 = arith.constant 2 : index
    %13 = vector.load %arg2[%c0_14, %c0_15, %c0_16, %c2] : memref<1x1x32x256xbf16, #tpu.memory_space<vmem>>, vector<1x1x32x144xbf16>
    %14 = vector.shape_cast %13 : vector<1x1x32x144xbf16> to vector<32x144xbf16>
    %c2_17 = arith.constant 2 : index
    %c0_18 = arith.constant 0 : index
    %c0_19 = arith.constant 0 : index
    %15 = vector.load %arg3[%c2_17, %c0_18, %c0_19] : memref<9x16x32xbf16, #tpu.memory_space<vmem>>, vector<1x16x32xbf16>
    %16 = vector.shape_cast %15 : vector<1x16x32xbf16> to vector<16x32xbf16>
    %cst_20 = arith.constant dense<0.000000e+00> : vector<16x144xf32>
    %17 = tpu.matmul %16, %14, %cst_20 {dimension_numbers = #tpu.dot_dimension_numbers<[1], [0], [0], [1], [0, 0, 1, 1], [], []>} : vector<16x32xbf16>, vector<32x144xbf16>, vector<16x144xf32> -> vector<16x144xf32>
    %18 = arith.addf %12, %17 : vector<16x144xf32>
    %c0_21 = arith.constant 0 : index
    %c0_22 = arith.constant 0 : index
    %c0_23 = arith.constant 0 : index
    %c18 = arith.constant 18 : index
    %19 = vector.load %arg2[%c0_21, %c0_22, %c0_23, %c18] : memref<1x1x32x256xbf16, #tpu.memory_space<vmem>>, vector<1x1x32x144xbf16>
    %20 = vector.shape_cast %19 : vector<1x1x32x144xbf16> to vector<32x144xbf16>
    %c3 = arith.constant 3 : index
    %c0_24 = arith.constant 0 : index
    %c0_25 = arith.constant 0 : index
    %21 = vector.load %arg3[%c3, %c0_24, %c0_25] : memref<9x16x32xbf16, #tpu.memory_space<vmem>>, vector<1x16x32xbf16>
    %22 = vector.shape_cast %21 : vector<1x16x32xbf16> to vector<16x32xbf16>
    %cst_26 = arith.constant dense<0.000000e+00> : vector<16x144xf32>
    %23 = tpu.matmul %22, %20, %cst_26 {dimension_numbers = #tpu.dot_dimension_numbers<[1], [0], [0], [1], [0, 0, 1, 1], [], []>} : vector<16x32xbf16>, vector<32x144xbf16>, vector<16x144xf32> -> vector<16x144xf32>
    %24 = arith.addf %18, %23 : vector<16x144xf32>
    %c0_27 = arith.constant 0 : index
    %c0_28 = arith.constant 0 : index
    %c0_29 = arith.constant 0 : index
    %c19 = arith.constant 19 : index
    %25 = vector.load %arg2[%c0_27, %c0_28, %c0_29, %c19] : memref<1x1x32x256xbf16, #tpu.memory_space<vmem>>, vector<1x1x32x144xbf16>
    %26 = vector.shape_cast %25 : vector<1x1x32x144xbf16> to vector<32x144xbf16>
    %c4 = arith.constant 4 : index
    %c0_30 = arith.constant 0 : index
    %c0_31 = arith.constant 0 : index
    %27 = vector.load %arg3[%c4, %c0_30, %c0_31] : memref<9x16x32xbf16, #tpu.memory_space<vmem>>, vector<1x16x32xbf16>
    %28 = vector.shape_cast %27 : vector<1x16x32xbf16> to vector<16x32xbf16>
    %cst_32 = arith.constant dense<0.000000e+00> : vector<16x144xf32>
    %29 = tpu.matmul %28, %26, %cst_32 {dimension_numbers = #tpu.dot_dimension_numbers<[1], [0], [0], [1], [0, 0, 1, 1], [], []>} : vector<16x32xbf16>, vector<32x144xbf16>, vector<16x144xf32> -> vector<16x144xf32>
    %30 = arith.addf %24, %29 : vector<16x144xf32>
    %c0_33 = arith.constant 0 : index
    %c0_34 = arith.constant 0 : index
    %c0_35 = arith.constant 0 : index
    %c20 = arith.constant 20 : index
    %31 = vector.load %arg2[%c0_33, %c0_34, %c0_35, %c20] : memref<1x1x32x256xbf16, #tpu.memory_space<vmem>>, vector<1x1x32x144xbf16>
    %32 = vector.shape_cast %31 : vector<1x1x32x144xbf16> to vector<32x144xbf16>
    %c5 = arith.constant 5 : index
    %c0_36 = arith.constant 0 : index
    %c0_37 = arith.constant 0 : index
    %33 = vector.load %arg3[%c5, %c0_36, %c0_37] : memref<9x16x32xbf16, #tpu.memory_space<vmem>>, vector<1x16x32xbf16>
    %34 = vector.shape_cast %33 : vector<1x16x32xbf16> to vector<16x32xbf16>
    %cst_38 = arith.constant dense<0.000000e+00> : vector<16x144xf32>
    %35 = tpu.matmul %34, %32, %cst_38 {dimension_numbers = #tpu.dot_dimension_numbers<[1], [0], [0], [1], [0, 0, 1, 1], [], []>} : vector<16x32xbf16>, vector<32x144xbf16>, vector<16x144xf32> -> vector<16x144xf32>
    %36 = arith.addf %30, %35 : vector<16x144xf32>
    %c0_39 = arith.constant 0 : index
    %c0_40 = arith.constant 0 : index
    %c0_41 = arith.constant 0 : index
    %c36 = arith.constant 36 : index
    %37 = vector.load %arg2[%c0_39, %c0_40, %c0_41, %c36] : memref<1x1x32x256xbf16, #tpu.memory_space<vmem>>, vector<1x1x32x144xbf16>
    %38 = vector.shape_cast %37 : vector<1x1x32x144xbf16> to vector<32x144xbf16>
    %c6 = arith.constant 6 : index
    %c0_42 = arith.constant 0 : index
    %c0_43 = arith.constant 0 : index
    %39 = vector.load %arg3[%c6, %c0_42, %c0_43] : memref<9x16x32xbf16, #tpu.memory_space<vmem>>, vector<1x16x32xbf16>
    %40 = vector.shape_cast %39 : vector<1x16x32xbf16> to vector<16x32xbf16>
    %cst_44 = arith.constant dense<0.000000e+00> : vector<16x144xf32>
    %41 = tpu.matmul %40, %38, %cst_44 {dimension_numbers = #tpu.dot_dimension_numbers<[1], [0], [0], [1], [0, 0, 1, 1], [], []>} : vector<16x32xbf16>, vector<32x144xbf16>, vector<16x144xf32> -> vector<16x144xf32>
    %42 = arith.addf %36, %41 : vector<16x144xf32>
    %c0_45 = arith.constant 0 : index
    %c0_46 = arith.constant 0 : index
    %c0_47 = arith.constant 0 : index
    %c37 = arith.constant 37 : index
    %43 = vector.load %arg2[%c0_45, %c0_46, %c0_47, %c37] : memref<1x1x32x256xbf16, #tpu.memory_space<vmem>>, vector<1x1x32x144xbf16>
    %44 = vector.shape_cast %43 : vector<1x1x32x144xbf16> to vector<32x144xbf16>
    %c7 = arith.constant 7 : index
    %c0_48 = arith.constant 0 : index
    %c0_49 = arith.constant 0 : index
    %45 = vector.load %arg3[%c7, %c0_48, %c0_49] : memref<9x16x32xbf16, #tpu.memory_space<vmem>>, vector<1x16x32xbf16>
    %46 = vector.shape_cast %45 : vector<1x16x32xbf16> to vector<16x32xbf16>
    %cst_50 = arith.constant dense<0.000000e+00> : vector<16x144xf32>
    %47 = tpu.matmul %46, %44, %cst_50 {dimension_numbers = #tpu.dot_dimension_numbers<[1], [0], [0], [1], [0, 0, 1, 1], [], []>} : vector<16x32xbf16>, vector<32x144xbf16>, vector<16x144xf32> -> vector<16x144xf32>
    %48 = arith.addf %42, %47 : vector<16x144xf32>
    %c0_51 = arith.constant 0 : index
    %c0_52 = arith.constant 0 : index
    %c0_53 = arith.constant 0 : index
    %c38 = arith.constant 38 : index
    %49 = vector.load %arg2[%c0_51, %c0_52, %c0_53, %c38] : memref<1x1x32x256xbf16, #tpu.memory_space<vmem>>, vector<1x1x32x144xbf16>
    %50 = vector.shape_cast %49 : vector<1x1x32x144xbf16> to vector<32x144xbf16>
    %c8 = arith.constant 8 : index
    %c0_54 = arith.constant 0 : index
    %c0_55 = arith.constant 0 : index
    %51 = vector.load %arg3[%c8, %c0_54, %c0_55] : memref<9x16x32xbf16, #tpu.memory_space<vmem>>, vector<1x16x32xbf16>
    %52 = vector.shape_cast %51 : vector<1x16x32xbf16> to vector<16x32xbf16>
    %cst_56 = arith.constant dense<0.000000e+00> : vector<16x144xf32>
    %53 = tpu.matmul %52, %50, %cst_56 {dimension_numbers = #tpu.dot_dimension_numbers<[1], [0], [0], [1], [0, 0, 1, 1], [], []>} : vector<16x32xbf16>, vector<32x144xbf16>, vector<16x144xf32> -> vector<16x144xf32>
    %54 = arith.addf %48, %53 : vector<16x144xf32>
    %c0_57 = arith.constant 0 : index
    %c0_58 = arith.constant 0 : index
    %55 = vector.load %arg4[%c0_57, %c0_58] : memref<16x1xf32, #tpu.memory_space<vmem>>, vector<16x1xf32>
    %56 = vector.broadcast %55 : vector<16x1xf32> to vector<16x144xf32>
    %57 = arith.addf %54, %56 : vector<16x144xf32>
    %cst_59 = arith.constant 0.000000e+00 : f32
    %58 = vector.broadcast %cst_59 : f32 to vector<16x144xf32>
    %59 = arith.maximumf %57, %58 : vector<16x144xf32>
    %c0_60 = arith.constant 0 : index
    %c0_61 = arith.constant 0 : index
    %60 = vector.load %arg5[%c0_60, %c0_61] : memref<2x16xf32, #tpu.memory_space<vmem>>, vector<2x16xf32>
    %cst_62 = arith.constant dense<0.000000e+00> : vector<2x144xf32>
    %61 = tpu.matmul %60, %59, %cst_62 {dimension_numbers = #tpu.dot_dimension_numbers<[1], [0], [0], [1], [0, 0, 1, 1], [], []>} : vector<2x16xf32>, vector<16x144xf32>, vector<2x144xf32> -> vector<2x144xf32>
    %c0_63 = arith.constant 0 : index
    %c0_64 = arith.constant 0 : index
    %62 = vector.load %arg6[%c0_63, %c0_64] : memref<2x1xf32, #tpu.memory_space<vmem>>, vector<2x1xf32>
    %63 = vector.broadcast %62 : vector<2x1xf32> to vector<2x144xf32>
    %64 = arith.addf %61, %63 : vector<2x144xf32>
    %65 = arith.negf %64 : vector<2x144xf32>
    %66 = math.exp %65 : vector<2x144xf32>
    %cst_65 = arith.constant 1.000000e+00 : f32
    %67 = vector.broadcast %cst_65 : f32 to vector<2x144xf32>
    %68 = arith.addf %67, %66 : vector<2x144xf32>
    %69 = arith.divf %67, %68 : vector<2x144xf32>
    %70 = arith.truncf %69 : vector<2x144xf32> to vector<2x144xbf16>
    %c0_66 = arith.constant 0 : index
    %c0_67 = arith.constant 0 : index
    %c0_68 = arith.constant 0 : index
    %c0_69 = arith.constant 0 : index
    %71 = vector.load %arg7[%c0_66, %c0_67, %c0_68, %c0_69] : memref<1x1x2x144xbf16, #tpu.memory_space<vmem>>, vector<1x1x2x144xbf16>
    %72 = vector.shape_cast %71 : vector<1x1x2x144xbf16> to vector<2x144xbf16>
    %73 = vector.shape_cast %70 : vector<2x144xbf16> to vector<1x1x2x144xbf16>
    tpu.vector_store %arg7[%c0_66, %c0_67, %c0_68, %c0_69], %73 {strides = array<i32>} : memref<1x1x2x144xbf16, #tpu.memory_space<vmem>>, vector<1x1x2x144xbf16>,
    return
  }
  func.func @transform_0(%arg0: i32, %arg1: i32) -> (i32, i32, i32, i32) {
    %c0_i32 = arith.constant 0 : i32
    %c0_i32_0 = arith.constant 0 : i32
    %c0_i32_1 = arith.constant 0 : i32
    return %arg0, %arg1, %c0_i32, %c0_i32_0 : i32, i32, i32, i32
  }
  func.func @transform_1(%arg0: i32, %arg1: i32) -> (i32, i32, i32) {
    %c0_i32 = arith.constant 0 : i32
    %c0_i32_0 = arith.constant 0 : i32
    %c0_i32_1 = arith.constant 0 : i32
    %c0_i32_2 = arith.constant 0 : i32
    return %c0_i32, %c0_i32_0, %c0_i32_1 : i32, i32, i32
  }
  func.func @transform_2(%arg0: i32, %arg1: i32) -> (i32, i32) {
    %c0_i32 = arith.constant 0 : i32
    %c0_i32_0 = arith.constant 0 : i32
    %c0_i32_1 = arith.constant 0 : i32
    return %c0_i32, %c0_i32_0 : i32, i32
  }
  func.func @transform_3(%arg0: i32, %arg1: i32) -> (i32, i32) {
    %c0_i32 = arith.constant 0 : i32
    %c0_i32_0 = arith.constant 0 : i32
    %c0_i32_1 = arith.constant 0 : i32
    return %c0_i32, %c0_i32_0 : i32, i32
  }
  func.func @transform_4(%arg0: i32, %arg1: i32) -> (i32, i32) {
    %c0_i32 = arith.constant 0 : i32
    %c0_i32_0 = arith.constant 0 : i32
    %c0_i32_1 = arith.constant 0 : i32
    return %c0_i32, %c0_i32_0 : i32, i32
  }
  func.func @transform_5(%arg0: i32, %arg1: i32) -> (i32, i32, i32, i32) {
    %c0_i32 = arith.constant 0 : i32
    %c0_i32_0 = arith.constant 0 : i32
    %c0_i32_1 = arith.constant 0 : i32
    return %arg0, %arg1, %c0_i32, %c0_i32_0 : i32, i32, i32, i32
  }
}

</mosaic_0001>

<bundles_post_ra>
// kernel: seg_detector_forward.1
= control target key start
LH: loop header
LB: loop body
LE: loop exit
PB: predicated region body
PF: predicated region fallthrough
CT: control target
= control target key end

     0   :  { %s1392_s18 = smov 0   ;;  %s1394_s19 = smov 0   ;;  %s1566_s0 = inlined_call_operand.vmem [shape: bf16[2,2,32,256], index: 0, kind: input, shape index: {}]   ;;  %s1567_s1 = inlined_call_operand.vmem [shape: bf16[9,16,32], index: 1, kind: input, shape index: {}]   ;;  %s1568_s2 = inlined_call_operand.vmem [shape: f32[16,1], index: 2, kind: input, shape index: {}]   ;;  %s1569_s3 = inlined_call_operand.vmem [shape: f32[2,16], index: 3, kind: input, shape index: {}]   ;;  %s1570_s4 = inlined_call_operand.vmem [shape: f32[2,1], index: 4, kind: input, shape index: {}]   ;;  %s1571_s5 = inlined_call_operand.vmem [shape: bf16[2,2,2,144], index: 5, kind: output, shape index: {}]  }
   0x1   :  { %s1396_s20 = smov 0   ;;  %s1398_s21 = smov 0  }
   0x2   :  { %s1400_s22 = smov 0  }
   0x3 LB: > { %s24_s23 = sadd.s32 1, %s1341_s20  ;;  %s27_s24 = sadd.s32 1, %s1345_s21  ;;  %s1349_s22 = sphi %s1400_s22, %s15_s22   ;;  %s1345_s21 = sphi %s1398_s21, %s1575_s21   ;;  %s1341_s20 = sphi %s1396_s20, %s1574_s20   ;;  %s1337_s19 = sphi %s1394_s19, %s1573_s19   ;;  %s1333_s18 = sphi %s1392_s18, %s1572_s18  }
   0x4   : > { %p25_p0 = scmp.ge.s32.totalorder %s24_s23, 2  ;;  %p1149_p1 = scmp.ge.s32.totalorder %s1349_s22, 1 }
   0x5   : > { %p207_p2 = scmp.lt.s32.totalorder %s1349_s22, 5 }
   0x6   : > { %s1577_s23 = smov (%p25_p0, %s24_s23), 0  ;;  %s1579_s24 = smov (!%p25_p0, %s27_s24), %s1345_s21 }
   0x7   : > { %p208_p3 = pnand %p1149_p1, %p207_p2  ;;  %p29_p4 = scmp.ge.s32.totalorder %s1579_s24, 2 }
   0x8   : > { %p242_p5 = scmp.lt.s32.totalorder (!%p208_p3), %s1337_s19, 1  ;;  %p244_p6 = scmp.lt.s32.totalorder (!%p208_p3), %s1333_s18, 1  ;;  %v1352_v3 = vmov (!%p208_p3), 0   ;;  %v919_v5 = vld [vmem:[%s1568_s2 + $0x8] sm:$0xff] (!%p208_p3)  ;;  %v918_v6 = vld [vmem:[%s1568_s2] sm:$0xff] (!%p208_p3)  ;;  %vm569_vm0 = vcmask (!%p208_p3), 891904  }
   0x9   : > { %s1581_s24 = smov (%p29_p4, %s1579_s24), 0  ;;  %211 = sbr.rel (%p208_p3) target bundleno = 676 (0x2a4), region = 40 }
   0xa   : > { %s1351_s7 = smov (!%p208_p3), 109   ;;  %611 = vmatprep.mubr.bf16.mxu0 (!%p208_p3), %v1352_v3  ;;  %341 = vmatprep.mubr.bf16.mxu1 (!%p208_p3), %v1352_v3  ;;  %s1353_s8 = smov (!%p208_p3), 127   ;;  %v939_v7 = vld [vmem:[%s1570_s4] sm:$0x3] (!%p208_p3)  ;;  %vm298_vm1 = vcmask (!%p208_p3), 1039360   ;;  %vm642_vm2 = vcmask (!%p208_p3), 883712  }
   0xb   : > { %1287 = vset.pattern.permute.xlu1 (!%p208_p3), %v1352_v3  ;;  %1286 = vset.pattern.permute.xlu0 (!%p208_p3), %v1352_v3  ;;  %s1354_s9 = smov (!%p208_p3), 108   ;;  %s1355_s10 = smov (!%p208_p3), 92   ;;  %v1294_v17 = vld [vmem:[%s1567_s1 + $0x20] sm:$0xff] (!%p208_p3)   ;;  %vm305_vm3 = vcmask (!%p208_p3), 261120   ;;  %v1295_v24 = vld [vmem:[%s1567_s1 + $0x8] sm:$0xff] (!%p208_p3)   ;;  %vm715_vm4 = vcmask (!%p208_p3), 752640  }
   0xc   : > { %s1356_s11 = smov (!%p208_p3), 126   ;;  %s1357_s12 = smov (!%p208_p3), 91   ;;  %v1296_v28 = vld [vmem:[%s1567_s1 + $0x28] sm:$0xff] (!%p208_p3)   ;;  %v1297_v35 = vld [vmem:[%s1567_s1] sm:$0xff] (!%p208_p3)   ;;  %vm423_vm5 = vcmask (!%p208_p3), 1031168   ;;  %v1298_v39 = vld [vmem:[%s1567_s1 + $0x30] sm:$0xff] (!%p208_p3)  }
   0xd   : > { %s1358_s13 = smov (!%p208_p3), 110   ;;  %s1359_s14 = smov (!%p208_p3), 90   ;;  %vm788_vm6 = vcmask (!%p208_p3), 744448   ;;  %v1299_v46 = vld [vmem:[%s1567_s1 + $0x10] sm:$0xff] (!%p208_p3)   ;;  %v1300_v50 = vld [vmem:[%s1567_s1 + $0x38] sm:$0xff] (!%p208_p3)   ;;  %vm496_vm7 = vcmask (!%p208_p3), 900096  }
   0xe   : > { %vm861_vm8 = vcmask (!%p208_p3), 736256   ;;  %v1301_v60 = vld [vmem:[%s1567_s1 + $0x18] sm:$0xff] (!%p208_p3)   ;;  %vm945_vm9 = vcmask (!%p208_p3), 130048   ;;  %vm1052_vm10 = vcmask (!%p208_p3), 1040384   ;;  %vm1053_vm11 = vcmask (!%p208_p3), 123905  }
   0xf   : > { %vm1054_vm12 = vmor (!%p208_p3), %vm1053_vm11, %vm1052_vm10 }
  0x10   : > { %s1583_s19 = smov (!%p242_p5, %s1337_s19), 1  ;;  %s1585_s18 = smov (!%p244_p6, %s1333_s18), 1 }
  0x11   : > { %s1151_s25 = sshll.u32 %s1583_s19, 4  ;;  %s1150_s26 = sshll.u32 %s1585_s18, 3 }
  0x12   : > { %s248_s27 = sadd.s32 %s1151_s25, %s1150_s26  ;;  %s1153_s30 = sshll.u32 %s1585_s18, 1 }
  0x13   : > { %s1152_s28 = sshll.u32 %s248_s27, 2 }
  0x14   : > { %s250_s6 = scalar_lea.vmem %s1566_s0, %s1152_s28 }
  0x15   : > { %v1431_v0 = vld [vmem:[%s250_s6 + $0x10] ss:$8 sps:$4 sm:$0xff]   ;;  %v1433_v1 = vld [vmem:[%s250_s6] ss:$8 sps:$4 sm:$0xff]   ;;  %v1436_v2 = vld [vmem:[%s250_s6 + $0x14] ss:$8 sps:$4 sm:$0xff]  }
  0x16   : > { %565 = vrot.lane.b32.xlu1 %v1431_v0, %s1351_s7  ;;  %561 = vrot.lane.b32.xlu0 %v1433_v1, %s1351_s7  ;;  %v1440_v4 = vld [vmem:[%s250_s6 + $0x4] ss:$8 sps:$4 sm:$0xff]   ;;  %s1154_s6 = sshll.u32 %s1583_s19, 2 }
  0x1a   : > { %567 = vrot.lane.b32.xlu1 %v1436_v2, %s1351_s7  ;;  %563 = vrot.lane.b32.xlu0 %v1440_v4, %s1351_s7  ;;  %s257_s7 = sadd.s32 %s1154_s6, %s1153_s30 }
  0x1e   : > { %292 = vrot.lane.b32.xlu1 %v1440_v4, %s1353_s8  ;;  %290 = vrot.lane.b32.xlu0 %v1433_v1, %s1353_s8 }
  0x22   : > { %636 = vrot.lane.b32.xlu1 %v1440_v4, %s1354_s9  ;;  %634 = vrot.lane.b32.xlu0 %v1433_v1, %s1354_s9 }
  0x26   : > { %296 = vrot.lane.b32.xlu1 %v1436_v2, %s1353_s8  ;;  %294 = vrot.lane.b32.xlu0 %v1431_v0, %s1353_s8 }
  0x2a   : > { %640 = vrot.lane.b32.xlu1 %v1436_v2, %s1354_s9  ;;  %638 = vrot.lane.b32.xlu0 %v1431_v0, %s1354_s9 }
  0x2e   : > { %709 = vrot.lane.b32.xlu1 %v1440_v4, %s1355_s10  ;;  %707 = vrot.lane.b32.xlu0 %v1433_v1, %s1355_s10 }
  0x32   : > { %713 = vrot.lane.b32.xlu1 %v1436_v2, %s1355_s10  ;;  %711 = vrot.lane.b32.xlu0 %v1431_v0, %s1355_s10  ;;  %s258_s10 = scalar_lea.vmem %s1571_s5, %s257_s7 }
  0x36   : > { %417 = vrot.lane.b32.xlu1 %v1440_v4, %s1356_s11  ;;  %415 = vrot.lane.b32.xlu0 %v1433_v1, %s1356_s11 }
  0x3a   : > { %782 = vrot.lane.b32.xlu1 %v1440_v4, %s1357_s12  ;;  %780 = vrot.lane.b32.xlu0 %v1433_v1, %s1357_s12 }
  0x3e   : > { %421 = vrot.lane.b32.xlu1 %v1436_v2, %s1356_s11  ;;  %419 = vrot.lane.b32.xlu0 %v1431_v0, %s1356_s11 }
  0x42   : > { %786 = vrot.lane.b32.xlu1 %v1436_v2, %s1357_s12  ;;  %784 = vrot.lane.b32.xlu0 %v1431_v0, %s1357_s12 }
  0x46   : > { %490 = vrot.lane.b32.xlu1 %v1440_v4, %s1358_s13  ;;  %488 = vrot.lane.b32.xlu0 %v1433_v1, %s1358_s13 }
  0x4a   : > { %855 = vrot.lane.b32.xlu1 %v1440_v4, %s1359_s14  ;;  %853 = vrot.lane.b32.xlu0 %v1433_v1, %s1359_s14 }
  0x4e   : > { %494 = vrot.lane.b32.xlu1 %v1436_v2, %s1358_s13  ;;  %492 = vrot.lane.b32.xlu0 %v1431_v0, %s1358_s13 }
  0x52   : > { %859 = vrot.lane.b32.xlu1 %v1436_v2, %s1359_s14  ;;  %857 = vrot.lane.b32.xlu0 %v1431_v0, %s1359_s14 }
  0x56   : > { %927 = vperm.xlu1 %1287, %v919_v5   ;;  %922 = vperm.xlu0 %1286, %v918_v6  }
  0x5a   : > { %942 = vperm.xlu1 %1287, %v939_v7  }
  0x88   : > { %v566_v8 = vpop.permute.xlu1 %565  ;;  %v562_v9 = vpop.permute.xlu0 %561 }
  0x8c   : > { %v568_v10 = vpop.permute.xlu1 %567  ;;  %v564_v11 = vpop.permute.xlu0 %563 }
  0x8d   : > { %579 = vmatprep.subr.bf16.mxu0 %v564_v11  ;;  %v570_v12 = vsel %vm569_vm0, %v562_v9, %v564_v11  ;;  %v571_v16 = vsel %vm569_vm0, %v566_v8, %v568_v10 }
  0x8e   : > { %580 = vmatpush1.bf16.msra.mxu0 %v570_v12 }
  0x8f   : > { %581 = vmatprep.subr.bf16.mxu0 %v568_v10 }
  0x90   : > { %v293_v13 = vpop.permute.xlu1 %292  ;;  %v291_v14 = vpop.permute.xlu0 %290 }
  0x91   : > { %309 = vmatprep.subr.bf16.mxu1 %v293_v13  ;;  %v299_v15 = vsel %vm298_vm1, %v291_v14, %v293_v13 }
  0x92   : > { %310 = vmatpush1.bf16.msra.mxu1 %v299_v15  ;;  %582 = vmatpush1.bf16.msra.mxu0 %v571_v16 }
  0x94   : > { %v637_v18 = vpop.permute.xlu1 %636  ;;  %v635_v19 = vpop.permute.xlu0 %634 }
  0x95   : > { %652 = vmatprep.subr.bf16.mxu0 %v637_v18  ;;  %v643_v20 = vsel %vm642_vm2, %v635_v19, %v637_v18  ;;  %1176 = vmatmul.mubr.msk.bf16.vlgmr.msra.gmra.mrb[0].mxu0 %vm305_vm3, %v1294_v17 }
  0x96   : > { %653 = vmatpush1.bf16.msra.mxu0 %v643_v20  ;;  %684 = vmatprep.mubr.bf16.mxu0 %v1352_v3 }
  0x98   : > { %v297_v21 = vpop.permute.xlu1 %296  ;;  %v295_v22 = vpop.permute.xlu0 %294 }
  0x99   : > { %311 = vmatprep.subr.bf16.mxu1 %v297_v21  ;;  %v300_v23 = vsel %vm298_vm1, %v295_v22, %v297_v21 }
  0x9a   : > { %312 = vmatpush1.bf16.msra.mxu1 %v300_v23 }
  0x9b   : > { %364 = vmatprep.subr.bf16.mxu1 %v1440_v4 }
  0x9c   : > { %v641_v25 = vpop.permute.xlu1 %640  ;;  %v639_v26 = vpop.permute.xlu0 %638 }
  0x9d   : > { %654 = vmatprep.subr.bf16.mxu0 %v641_v25  ;;  %v644_v27 = vsel %vm642_vm2, %v639_v26, %v641_v25  ;;  %1162 = vmatmul.mubr.msk.bf16.vlgmr.msra.gmra.mrb[0].mxu1 %vm305_vm3, %v1295_v24  ;;  %v938_v26 = vld [vmem:[%s1569_s3] sm:$0x3] }
  0x9e   : > { %655 = vmatpush1.bf16.msra.mxu0 %v644_v27  ;;  %365 = vmatpush1.bf16.msra.mxu1 %v1433_v1  ;;  %v1360_v1 = vmov 0.0  }
  0x9f   : > { %366 = vmatprep.subr.bf16.mxu1 %v1436_v2  ;;  %396 = vmatprep.mubr.bf16.mxu1 %v1352_v3 }
  0xa0   : > { %v710_v29 = vpop.permute.xlu1 %709  ;;  %v708_v30 = vpop.permute.xlu0 %707 }
  0xa1   : > { %725 = vmatprep.subr.bf16.mxu0 %v710_v29  ;;  %v716_v31 = vsel %vm715_vm4, %v708_v30, %v710_v29  ;;  %1180 = vmatmul.mubr.msk.bf16.vlgmr.msra.gmra.mrb[0].mxu0 %vm305_vm3, %v1296_v28 }
  0xa2   : > { %726 = vmatpush1.bf16.msra.mxu0 %v716_v31  ;;  %367 = vmatpush1.bf16.msra.mxu1 %v1431_v0  ;;  %v1302_v0 = vld [vmem:[%s1567_s1 + $0x40] sm:$0xff]  }
  0xa3   : > { %757 = vmatprep.mubr.bf16.mxu0 %v1352_v3 }
  0xa4   : > { %v714_v32 = vpop.permute.xlu1 %713  ;;  %v712_v33 = vpop.permute.xlu0 %711 }
  0xa5   : > { %727 = vmatprep.subr.bf16.mxu0 %v714_v32  ;;  %v717_v34 = vsel %vm715_vm4, %v712_v33, %v714_v32 }
  0xa6   : > { %728 = vmatpush1.bf16.msra.mxu0 %v717_v34 }
  0xa8   : > { %v418_v36 = vpop.permute.xlu1 %417  ;;  %v416_v37 = vpop.permute.xlu0 %415 }
  0xa9   : > { %433 = vmatprep.subr.bf16.mxu1 %v418_v36  ;;  %v424_v38 = vsel %vm423_vm5, %v416_v37, %v418_v36  ;;  %1164 = vmatmul.mubr.msk.bf16.vlgmr.msra.gmra.mrb[0].mxu1 %vm305_vm3, %v1297_v35 }
  0xaa   : > { %434 = vmatpush1.bf16.msra.mxu1 %v424_v38  ;;  %465 = vmatprep.mubr.bf16.mxu1 %v1352_v3  ;;  %v1361_v38 = vmov 1966171168  }
  0xac   : > { %v783_v40 = vpop.permute.xlu1 %782  ;;  %v781_v41 = vpop.permute.xlu0 %780 }
  0xad   : > { %798 = vmatprep.subr.bf16.mxu0 %v783_v40  ;;  %v789_v42 = vsel %vm788_vm6, %v781_v41, %v783_v40  ;;  %1184 = vmatmul.mubr.msk.bf16.vlgmr.msra.gmra.mrb[0].mxu0 %vm305_vm3, %v1298_v39  ;;  %v1038_v39 = vunpack.c.l.s4 %v1361_v38  ;;  %v1040_v40 = vlaneseq }
  0xae   : > { %799 = vmatpush1.bf16.msra.mxu0 %v789_v42  ;;  %830 = vmatprep.mubr.bf16.mxu0 %v1352_v3 }
  0xaf   : > { %v1039_v41 = vunpack.c.0.s8 %v1038_v39  ;;  %v1041_v42 = vshrl.u32 %v1040_v40, 7 }
  0xb0   : > { %v422_v43 = vpop.permute.xlu1 %421  ;;  %v420_v44 = vpop.permute.xlu0 %419 }
  0xb1   : > { %435 = vmatprep.subr.bf16.mxu1 %v422_v43  ;;  %v425_v45 = vsel %vm423_vm5, %v420_v44, %v422_v43  ;;  %v1042_v44 = vsub.s32 %v1039_v41, %v1041_v42 }
  0xb2   : > { %436 = vmatpush1.bf16.msra.mxu1 %v425_v45 }
  0xb4   : > { %v787_v47 = vpop.permute.xlu1 %786  ;;  %v785_v48 = vpop.permute.xlu0 %784 }
  0xb5   : > { %800 = vmatprep.subr.bf16.mxu0 %v787_v47  ;;  %v790_v49 = vsel %vm788_vm6, %v785_v48, %v787_v47  ;;  %1168 = vmatmul.mubr.msk.bf16.vlgmr.msra.gmra.mrb[0].mxu1 %vm305_vm3, %v1299_v46 }
  0xb6   : > { %801 = vmatpush1.bf16.msra.mxu0 %v790_v49  ;;  %538 = vmatprep.mubr.bf16.mxu1 %v1352_v3 }
  0xb8   : > { %v491_v51 = vpop.permute.xlu1 %490  ;;  %v489_v52 = vpop.permute.xlu0 %488 }
  0xb9   : > { %506 = vmatprep.subr.bf16.mxu1 %v491_v51  ;;  %v497_v53 = vsel %vm496_vm7, %v489_v52, %v491_v51  ;;  %1188 = vmatmul.mubr.msk.bf16.vlgmr.msra.gmra.mrb[0].mxu0 %vm305_vm3, %v1300_v50 }
  0xba   : > { %507 = vmatpush1.bf16.msra.mxu1 %v497_v53  ;;  %903 = vmatprep.mubr.bf16.mxu0 %v1352_v3 }
  0xbc   : > { %v856_v54 = vpop.permute.xlu1 %855  ;;  %v854_v55 = vpop.permute.xlu0 %853 }
  0xbd   : > { %871 = vmatprep.subr.bf16.mxu0 %v856_v54  ;;  %v862_v56 = vsel %vm861_vm8, %v854_v55, %v856_v54 }
  0xbe   : > { %872 = vmatpush1.bf16.msra.mxu0 %v862_v56 }
  0xc0   : > { %v495_v57 = vpop.permute.xlu1 %494  ;;  %v493_v58 = vpop.permute.xlu0 %492 }
  0xc1   : > { %508 = vmatprep.subr.bf16.mxu1 %v495_v57  ;;  %v498_v59 = vsel %vm496_vm7, %v493_v58, %v495_v57 }
  0xc2   : > { %509 = vmatpush1.bf16.msra.mxu1 %v498_v59 }
  0xc4   : > { %v860_v61 = vpop.permute.xlu1 %859  ;;  %v858_v62 = vpop.permute.xlu0 %857 }
  0xc5   : > { %873 = vmatprep.subr.bf16.mxu0 %v860_v61  ;;  %v863_v63 = vsel %vm861_vm8, %v858_v62, %v860_v61  ;;  %1172 = vmatmul.mubr.msk.bf16.vlgmr.msra.gmra.mrb[0].mxu1 %vm305_vm3, %v1301_v60 }
  0xc6   : > { %874 = vmatpush1.bf16.msra.mxu0 %v863_v63  ;;  %1013 = vmatprep.mubr.f32.mxu1 %v1360_v1 }
  0xc9   : > { %1192 = vmatmul.mubr.msk.bf16.vlgmr.msra.gmra.mrb[0].mxu0 %vm305_vm3, %v1302_v0 }
  0xd5   : > { %v923_v7 = vpop.permute.xlu0 %922  ;;  %v928_v15 = vpop.permute.xlu1 %927 }
  0xd9   : > { %v943_v27 = vpop.permute.xlu1 %942 }
 0x198   : > { %v540_v2 = vpop.f32.mrb[0].mxu1 }
 0x199   : > { %v542_v3 = vpop.f32.mrb[1].mxu1 }
 0x19a   : > { %v544_v4 = vpop.f32.mrb[2].mxu1 }
 0x19b   : > { %v546_v5 = vpop.f32.mrb[3].mxu1 }
 0x19c   : > { %v905_v6 = vpop.f32.mrb[0].mxu0 }
 0x19d   : > { %v1203_v8 = vadd.f32 %v905_v6, %v540_v2  ;;  %v907_v9 = vpop.f32.mrb[1].mxu0 }
 0x19e   : > { %v1204_v10 = vadd.f32 %v907_v9, %v542_v3  ;;  %v909_v11 = vpop.f32.mrb[2].mxu0 }
 0x19f   : > { %v1205_v12 = vadd.f32 %v909_v11, %v544_v4  ;;  %v930_v13 = vadd.f32 %v1203_v8, %v923_v7  ;;  %v911_v14 = vpop.f32.mrb[3].mxu0 }
 0x1a0   : > { %v931_v16 = vadd.f32 %v1204_v10, %v923_v7  ;;  %v1206_v17 = vadd.f32 %v911_v14, %v546_v5 }
 0x1a1   : > { %v932_v18 = vadd.f32 %v1205_v12, %v928_v15  ;;  %v934_v21 = vmax.f32 %v930_v13, 0.0 }
 0x1a2   : > { %v933_v19 = vadd.f32 %v1206_v17, %v928_v15  ;;  %v935_v22 = vmax.f32 %v931_v16, 0.0 }
 0x1a3   : > { %v936_v20 = vmax.f32 %v932_v18, 0.0 }
 0x1a4   : > { %v937_v23 = vmax.f32 %v933_v19, 0.0 }
 0x1a5   : > { %v1201_v24 = vpack.c.bf16 %v936_v20, %v934_v21 }
 0x1a6   : > { %v1199_v25 = vpack.c.bf16 %v937_v23, %v935_v22 }
 0x1a8   : > { %1200 = vmatprep.subr.bf16.mxu1 %v1199_v25 }
 0x1a9   : > { %1202 = vmatpush1.bf16.msra.mxu1 %v1201_v24 }
 0x1ac   : > { %1193 = vmatmul.mubr.msk.f32.vlgmr.msra.gmra.mrb[4].mxu1 %vm945_vm9, %v938_v26 }
 0x27f   : > { %v1015_v28 = vpop.f32.mrb[4].mxu1 }
 0x280   : > { %v1016_v29 = vadd.f32 %v1015_v28, %v943_v27  ;;  %v1017_v30 = vpop.f32.mrb[5].mxu1 }
 0x281   : > { %v1018_v31 = vadd.f32 %v1017_v30, %v943_v27 }
 0x282   : > { %v1194_v32 = vmul.f32 -1.442695, %v1016_v29 }
 0x283   : > { %v1195_v33 = vmul.f32 -1.442695, %v1018_v31 }
 0x284   : > { %1303 = vpow2.f32 %v1194_v32 }
 0x285   : > { %1305 = vpow2.f32 %v1195_v33 }
 0x28e   : > { %v1304_v34 = vpop.eup %1303 }
 0x28f   : > { %v1306_v35 = vpop.eup %1305  ;;  %v1026_v36 = vadd.f32 1.0, %v1304_v34 }
 0x290   : > { %v1027_v37 = vadd.f32 1.0, %v1306_v35 }
 0x291   : > { %1307 = vrcp.f32 %v1026_v36 }
 0x292   : > { %1309 = vrcp.f32 %v1027_v37 }
 0x29b   : > { %v1308_v43 = vpop.eup %1307 }
 0x29c   : > { %v1310_v45 = vpop.eup %1309 }
 0x29d   : > { %v1196_v46 = vpack.c.bf16 %v1310_v45, %v1308_v43 }
 0x29f   : > { %v1043_v47 = vrot.slane %v1196_v46, %v1042_v44 }
 0x2a1   : > { %v1050_v48 = vrot.slane %v1043_v47, %v1042_v44 }
 0x2a3   : > { %1055 = vst.msk [vmem:[%s258_s10] sm:$0x3] %vm1054_vm12, %v1050_v48 }
 0x2a4 PF: > { %s15_s22 = sadd.s32 1, %s1349_s22   ;;  %s1572_s18 = smov %s1341_s20 }
 0x2a5   : > { %p12_p7 = scmp.ge.s32.totalorder %s15_s22, 6   ;;  %s1573_s19 = smov %s1345_s21 }
 0x2a6   : > { %s1574_s20 = smov %s1577_s23  ;;  %s1575_s21 = smov %s1581_s24 }
 0x2a7   :  { %14 = sbr.rel (!%p12_p7) target bundleno = 3 (0x3), region = 78 }

</bundles_post_ra>
